<compile_context>
chip_gen: v5e
topology: v5e:2x2
jax: 0.10.0
libtpu: 0.0.40
codegen_flags: <defaults>
</compile_context>

<pallas_src>
import functools

import jax
import jax.numpy as jnp
from jax.experimental import pallas as pl
from jax.experimental.pallas import tpu as pltpu


def _round_up(x, m):
    return (x + m - 1) // m * m


def _attn_decoder_kernel(
    # inputs
    x_ref,                                   # (Bp, E) bf16  gathered embedding rows
    h_ref,                                   # (Bp, H) f32   hidden[0]
    wir_ref, wiz_ref, win_ref,               # (E, H) bf16   GRU W_ih per gate
    whr_ref, whz_ref, whn_ref,               # (H, H) bf16   GRU W_hh per gate
    br_ref, bz_ref, bni_ref, bnh_ref,        # (1, H) f32    GRU biases
    wout_ref, bout_ref,                      # (H, TV) bf16, (1, TV) f32  vocab tile k
    # outputs
    logits_ref,                              # (Bp, TV) f32  streamed tile of (Bp, Vp)
    lse_ref,                                 # (Bp, 1) f32   logsumexp (written at last tile)
    hnew_ref,                                # (Bp, H) f32   new hidden (written at tile 0)
    # scratch
    hbf_vmem,                                # (Bp, H) bf16  new hidden in matmul dtype
    m_vmem, l_vmem,                          # (Bp, 1) f32   online logsumexp state
):
    k = pl.program_id(0)

    @pl.when(k == 0)
    def _gru_prologue():
        # TODO(synk): nn.Dropout is modeled as eval-mode identity (inference semantics).
        x = x_ref[...]                        # (Bp, E) bf16
        h = h_ref[...]                        # (Bp, H) f32
        hb = h.astype(jnp.bfloat16)

        def dot(a, b):
            return jnp.dot(a, b, preferred_element_type=jnp.float32)

        # Single-step GRU cell (PyTorch gate order [r, z, n]).
        r = jax.nn.sigmoid(dot(x, wir_ref[...]) + dot(hb, whr_ref[...]) + br_ref[...])
        z = jax.nn.sigmoid(dot(x, wiz_ref[...]) + dot(hb, whz_ref[...]) + bz_ref[...])
        n = jnp.tanh(dot(x, win_ref[...]) + bni_ref[...]
                     + r * (dot(hb, whn_ref[...]) + bnh_ref[...]))
        h_new = (1.0 - z) * n + z * h         # (Bp, H) f32

        hnew_ref[...] = h_new
        hbf_vmem[...] = h_new.astype(jnp.bfloat16)
        m_vmem[...] = jnp.full(m_vmem.shape, -jnp.inf, jnp.float32)
        l_vmem[...] = jnp.zeros(l_vmem.shape, jnp.float32)

    # --- out-projection for vocab tile k: streamed write + online logsumexp ---
    logits = jnp.dot(hbf_vmem[...], wout_ref[...],
                     preferred_element_type=jnp.float32) + bout_ref[...]   # (Bp, TV)
    logits_ref[...] = logits          # per-tile writeback overlaps next tile's DMA/MXU

    m_prev = m_vmem[...]
    m_new = jnp.maximum(m_prev, jnp.max(logits, axis=1, keepdims=True))
    l_vmem[...] = (l_vmem[...] * jnp.exp(m_prev - m_new)
                   + jnp.sum(jnp.exp(logits - m_new), axis=1, keepdims=True))
    m_vmem[...] = m_new

    @pl.when(k == pl.num_programs(0) - 1)
    def _write_lse():
        lse_ref[...] = m_vmem[...] + jnp.log(l_vmem[...])


@functools.partial(jax.jit, static_argnames=("tile_v",))
def attn_decoder_forward(inp, hidden, encoder_outputs, params, *, tile_v=512):
    """AttnDecoderRNN.forward: returns (log_softmax(out(gru_out[0])), new_hidden).

    `encoder_outputs` is accepted for interface parity but, exactly as in the
    reference forward, its value never reaches the returned outputs.
    """
    del encoder_outputs
    emb = params["embedding"]                  # (V, E) bf16
    V, E = emb.shape
    w_out_p = params["w_out_t"]                # (H, Vp) bf16 -- pre-padded once
    b_out_p = params["b_out"]                  # (1, Vp) f32  -- padded cols are -1e30
    H, Vp = w_out_p.shape
    h0 = hidden[0].astype(jnp.float32)         # (B, H)
    B = h0.shape[0]

    # Clamp token ids (an out-of-range id would otherwise gather garbage).
    idx = jnp.clip(inp.reshape(-1).astype(jnp.int32), 0, V - 1)

    # Embedding gather in the wrapper: only B rows move (no per-row in-kernel DMA).
    x = jnp.take(emb, idx, axis=0).astype(jnp.bfloat16)        # (B, E)

    # Pad batch to a sublane multiple (8).
    Bp = _round_up(max(B, 8), 8)
    x_p = jnp.zeros((Bp, E), jnp.bfloat16).at[:B].set(x)
    h0_p = jnp.zeros((Bp, H), jnp.float32).at[:B].set(h0)

    # Vocab tile: lane multiple, dividing the (pre-padded) Vp. Single-tile fast path
    # falls out naturally when Vp <= tile_v (grid=(1,)).
    tv = min(_round_up(tile_v, 128), Vp)
    while Vp % tv:
        tv -= 128
    num_tiles = Vp // tv

    def const_spec(shape):
        n = len(shape)
        return pl.BlockSpec(shape, lambda k, _n=n: (0,) * _n)

    in_arrays = (
        x_p, h0_p,
        params["w_ir"], params["w_iz"], params["w_in"],
        params["w_hr"], params["w_hz"], params["w_hn"],
        params["b_r"], params["b_z"], params["b_ni"], params["b_nh"],
        w_out_p, b_out_p,
    )
    in_specs = [
        const_spec((Bp, E)), const_spec((Bp, H)),
        const_spec((E, H)), const_spec((E, H)), const_spec((E, H)),
        const_spec((H, H)), const_spec((H, H)), const_spec((H, H)),
        const_spec((1, H)), const_spec((1, H)), const_spec((1, H)), const_spec((1, H)),
        pl.BlockSpec((H, tv), lambda k: (0, k)),     # double-buffered weight tile
        pl.BlockSpec((1, tv), lambda k: (0, k)),
    ]
    out_specs = (
        pl.BlockSpec((Bp, tv), lambda k: (0, k)),    # streamed logits
        pl.BlockSpec((Bp, 1), lambda k: (0, 0)),     # logsumexp
        pl.BlockSpec((Bp, H), lambda k: (0, 0)),     # new hidden
    )
    out_shape = (
        jax.ShapeDtypeStruct((Bp, Vp), jnp.float32),
        jax.ShapeDtypeStruct((Bp, 1), jnp.float32),
        jax.ShapeDtypeStruct((Bp, H), jnp.float32),
    )

    grid_spec = pltpu.PrefetchScalarGridSpec(
        num_scalar_prefetch=0,
        grid=(num_tiles,),
        in_specs=in_specs,
        out_specs=out_specs,
        scratch_shapes=[
            pltpu.VMEM((Bp, H), jnp.bfloat16),   # new hidden in matmul dtype
            pltpu.VMEM((Bp, 1), jnp.float32),    # running max
            pltpu.VMEM((Bp, 1), jnp.float32),    # running sum
        ],
    )

    logits, lse, h_new_p = pl.pallas_call(
        _attn_decoder_kernel,
        out_shape=out_shape,
        grid_spec=grid_spec,
        compiler_params=pltpu.CompilerParams(
            dimension_semantics=("arbitrary",),   # vocab axis carries the logsumexp state
        ),
    )(*in_arrays)

    # log_softmax normalization fused with the un-padding slice (no extra kernel pass).
    logp = logits[:B, :V] - lse[:B]
    h_new = h_new_p[:B]
    return logp, h_new[None]


def prepare_params(embedding, w_ih, w_hh, b_ih, b_hh, w_out, b_out, *, pad_v_to=512):
    """Map PyTorch AttnDecoderRNN weights (torch layout) to the kernel layout.

    torch.nn.GRU packs gates as rows [r, z, n] of (3H, in); split per gate and transpose
    to (in, H). Matmul weights stored bf16 (kernel is weight-bandwidth-bound at small
    batch); biases stay f32; r/z biases pre-summed; the n-gate keeps b_in / b_hn separate
    because r gates only the hidden-side term. The out-projection is padded to a lane/tile
    multiple ONCE here (padded bias columns are -1e30 so they vanish from the logsumexp).
    attn / attn_combine exist in __init__, but their results never reach the forward's
    outputs, so they are not needed by the kernel.
    """
    H = w_hh.shape[1]
    V = w_out.shape[0]
    Vp = _round_up(V, max(pad_v_to, 128))

    def gate_t(w, g):
        return jnp.asarray(w[g * H:(g + 1) * H].T, jnp.bfloat16)

    w_out_p = jnp.zeros((H, Vp), jnp.bfloat16).at[:, :V].set(
        jnp.asarray(w_out.T, jnp.bfloat16))
    b_out_p = jnp.full((1, Vp), -1e30, jnp.float32).at[:, :V].set(
        jnp.asarray(b_out, jnp.float32)[None, :])

    return {
        "embedding": jnp.asarray(embedding, jnp.bfloat16),       # frozen embedding matrix
        "w_ir": gate_t(w_ih, 0), "w_iz": gate_t(w_ih, 1), "w_in": gate_t(w_ih, 2),
        "w_hr": gate_t(w_hh, 0), "w_hz": gate_t(w_hh, 1), "w_hn": gate_t(w_hh, 2),
        "b_r": jnp.asarray((b_ih[0:H] + b_hh[0:H])[None, :], jnp.float32),
        "b_z": jnp.asarray((b_ih[H:2 * H] + b_hh[H:2 * H])[None, :], jnp.float32),
        "b_ni": jnp.asarray(b_ih[2 * H:3 * H][None, :], jnp.float32),
        "b_nh": jnp.asarray(b_hh[2 * H:3 * H][None, :], jnp.float32),
        "w_out_t": w_out_p,                                       # (H, Vp) bf16, padded
        "b_out": b_out_p,                                         # (1, Vp) f32, padded
    }


def _reference(inp, hidden, params):
    """Pure-JAX reference of the same forward (eval mode, same bf16-weight numerics)."""
    V = params["embedding"].shape[0]
    idx = jnp.clip(inp.reshape(-1).astype(jnp.int32), 0, V - 1)
    x = params["embedding"][idx]                  # (B, E) bf16
    h = hidden[0].astype(jnp.float32)
    hb = h.astype(jnp.bfloat16)

    def dot(a, b):
        return jnp.dot(a, b, preferred_element_type=jnp.float32)

    r = jax.nn.sigmoid(dot(x, params["w_ir"]) + dot(hb, params["w_hr"]) + params["b_r"])
    z = jax.nn.sigmoid(dot(x, params["w_iz"]) + dot(hb, params["w_hz"]) + params["b_z"])
    n = jnp.tanh(dot(x, params["w_in"]) + params["b_ni"]
                 + r * (dot(hb, params["w_hn"]) + params["b_nh"]))
    h_new = (1.0 - z) * n + z * h
    logits = (dot(h_new.astype(jnp.bfloat16), params["w_out_t"]) + params["b_out"])[:, :V]
    return jax.nn.log_softmax(logits, axis=1), h_new[None]


if __name__ == "__main__":
    key = jax.random.PRNGKey(0)
    B, H, E, V, M = 2, 32, 32, 512, 10        # embedding_dim == hidden_size (attn cat)
    ks = jax.random.split(key, 10)

    embedding = jax.random.normal(ks[0], (V, E), jnp.float32)
    w_ih = 0.1 * jax.random.normal(ks[1], (3 * H, E), jnp.float32)   # GRU weight_ih_l0
    w_hh = 0.1 * jax.random.normal(ks[2], (3 * H, H), jnp.float32)   # GRU weight_hh_l0
    b_ih = 0.1 * jax.random.normal(ks[3], (3 * H,), jnp.float32)
    b_hh = 0.1 * jax.random.normal(ks[4], (3 * H,), jnp.float32)
    w_out = 0.1 * jax.random.normal(ks[5], (V, H), jnp.float32)      # out: Linear(H -> V)
    b_out = 0.1 * jax.random.normal(ks[6], (V,), jnp.float32)

    params = prepare_params(embedding, w_ih, w_hh, b_ih, b_hh, w_out, b_out)

    inp = jax.random.randint(ks[7], (B,), 0, V, jnp.int32)           # token ids
    hidden = jax.random.normal(ks[8], (1, B, H), jnp.float32)        # GRU hidden state
    encoder_outputs = jax.random.normal(ks[9], (M, H), jnp.float32)  # unused by forward

    logp, h_new = attn_decoder_forward(inp, hidden, encoder_outputs, params)
    jax.block_until_ready((logp, h_new))

    ref_logp, ref_h = _reference(inp, hidden, params)
    assert logp.shape == (B, V) and h_new.shape == (1, B, H)
    assert jnp.allclose(logp, ref_logp, atol=1e-2), "log-softmax mismatch"
    assert jnp.allclose(h_new, ref_h, atol=1e-2), "hidden state mismatch"

    print("KERNEL_OK")
</pallas_src>

<mosaic_0001>
module attributes {stable_mosaic.version = 11 : i64} {
  func.func @_attn_decoder_kernel(%arg0: i32, %arg1: memref<8x32xbf16, #tpu.memory_space<vmem>>, %arg2: memref<8x32xf32, #tpu.memory_space<vmem>>, %arg3: memref<32x32xbf16, #tpu.memory_space<vmem>>, %arg4: memref<32x32xbf16, #tpu.memory_space<vmem>>, %arg5: memref<32x32xbf16, #tpu.memory_space<vmem>>, %arg6: memref<32x32xbf16, #tpu.memory_space<vmem>>, %arg7: memref<32x32xbf16, #tpu.memory_space<vmem>>, %arg8: memref<32x32xbf16, #tpu.memory_space<vmem>>, %arg9: memref<1x32xf32, #tpu.memory_space<vmem>>, %arg10: memref<1x32xf32, #tpu.memory_space<vmem>>, %arg11: memref<1x32xf32, #tpu.memory_space<vmem>>, %arg12: memref<1x32xf32, #tpu.memory_space<vmem>>, %arg13: memref<32x512xbf16, #tpu.memory_space<vmem>>, %arg14: memref<1x512xf32, #tpu.memory_space<vmem>>, %arg15: memref<8x512xf32, #tpu.memory_space<vmem>>, %arg16: memref<8x1xf32, #tpu.memory_space<vmem>>, %arg17: memref<8x32xf32, #tpu.memory_space<vmem>>, %arg18: memref<8x32xbf16, #tpu.memory_space<vmem>>, %arg19: memref<8x1xf32, #tpu.memory_space<vmem>>, %arg20: memref<8x1xf32, #tpu.memory_space<vmem>>) attributes {dimension_semantics = [#tpu.dimension_semantics<arbitrary>], iteration_bounds = array<i64: 1>, scalar_prefetch = 0 : i64, scratch_operands = 3 : i64, tpu.core_type = #tpu.core_type<tc>, window_params = [{pipeline_mode = #tpu.pipeline_mode<synchronous>, transform_indices = @transform_0, window_bounds = array<i64: 8, 32>}, {pipeline_mode = #tpu.pipeline_mode<synchronous>, transform_indices = @transform_1, window_bounds = array<i64: 8, 32>}, {pipeline_mode = #tpu.pipeline_mode<synchronous>, transform_indices = @transform_2, window_bounds = array<i64: 32, 32>}, {pipeline_mode = #tpu.pipeline_mode<synchronous>, transform_indices = @transform_3, window_bounds = array<i64: 32, 32>}, {pipeline_mode = #tpu.pipeline_mode<synchronous>, transform_indices = @transform_4, window_bounds = array<i64: 32, 32>}, {pipeline_mode = #tpu.pipeline_mode<synchronous>, transform_indices = @transform_5, window_bounds = array<i64: 32, 32>}, {pipeline_mode = #tpu.pipeline_mode<synchronous>, transform_indices = @transform_6, window_bounds = array<i64: 32, 32>}, {pipeline_mode = #tpu.pipeline_mode<synchronous>, transform_indices = @transform_7, window_bounds = array<i64: 32, 32>}, {pipeline_mode = #tpu.pipeline_mode<synchronous>, transform_indices = @transform_8, window_bounds = array<i64: 1, 32>}, {pipeline_mode = #tpu.pipeline_mode<synchronous>, transform_indices = @transform_9, window_bounds = array<i64: 1, 32>}, {pipeline_mode = #tpu.pipeline_mode<synchronous>, transform_indices = @transform_10, window_bounds = array<i64: 1, 32>}, {pipeline_mode = #tpu.pipeline_mode<synchronous>, transform_indices = @transform_11, window_bounds = array<i64: 1, 32>}, {transform_indices = @transform_12, window_bounds = array<i64: 32, 512>}, {transform_indices = @transform_13, window_bounds = array<i64: 1, 512>}, {transform_indices = @transform_14, window_bounds = array<i64: 8, 512>}, {pipeline_mode = #tpu.pipeline_mode<synchronous>, transform_indices = @transform_15, window_bounds = array<i64: 8, 1>}, {pipeline_mode = #tpu.pipeline_mode<synchronous>, transform_indices = @transform_16, window_bounds = array<i64: 8, 32>}]} {
    %c0_i32 = arith.constant 0 : i32
    %0 = arith.cmpi eq, %arg0, %c0_i32 : i32
    %1 = arith.extui %0 : i1 to i32
    %c0_i32_0 = arith.constant 0 : i32
    %2 = arith.cmpi ne, %1, %c0_i32_0 : i32
    scf.if %2 {
      %c0_20 = arith.constant 0 : index
      %c0_21 = arith.constant 0 : index
      %29 = vector.load %arg1[%c0_20, %c0_21] : memref<8x32xbf16, #tpu.memory_space<vmem>>, vector<8x32xbf16>
      %c0_22 = arith.constant 0 : index
      %c0_23 = arith.constant 0 : index
      %30 = vector.load %arg2[%c0_22, %c0_23] : memref<8x32xf32, #tpu.memory_space<vmem>>, vector<8x32xf32>
      %31 = arith.truncf %30 : vector<8x32xf32> to vector<8x32xbf16>
      %c0_24 = arith.constant 0 : index
      %c0_25 = arith.constant 0 : index
      %32 = vector.load %arg3[%c0_24, %c0_25] : memref<32x32xbf16, #tpu.memory_space<vmem>>, vector<32x32xbf16>
      %cst_26 = arith.constant dense<0.000000e+00> : vector<8x32xf32>
      %33 = tpu.matmul %29, %32, %cst_26 {dimension_numbers = #tpu.dot_dimension_numbers<[1], [0], [0], [1], [0, 0, 1, 1], [], []>} : vector<8x32xbf16>, vector<32x32xbf16>, vector<8x32xf32> -> vector<8x32xf32>
      %c0_27 = arith.constant 0 : index
      %c0_28 = arith.constant 0 : index
      %34 = vector.load %arg6[%c0_27, %c0_28] : memref<32x32xbf16, #tpu.memory_space<vmem>>, vector<32x32xbf16>
      %cst_29 = arith.constant dense<0.000000e+00> : vector<8x32xf32>
      %35 = tpu.matmul %31, %34, %cst_29 {dimension_numbers = #tpu.dot_dimension_numbers<[1], [0], [0], [1], [0, 0, 1, 1], [], []>} : vector<8x32xbf16>, vector<32x32xbf16>, vector<8x32xf32> -> vector<8x32xf32>
      %36 = arith.addf %33, %35 : vector<8x32xf32>
      %c0_30 = arith.constant 0 : index
      %c0_31 = arith.constant 0 : index
      %37 = vector.load %arg9[%c0_30, %c0_31] : memref<1x32xf32, #tpu.memory_space<vmem>>, vector<1x32xf32>
      %38 = vector.broadcast %37 : vector<1x32xf32> to vector<8x32xf32>
      %39 = arith.addf %36, %38 : vector<8x32xf32>
      %40 = arith.negf %39 : vector<8x32xf32>
      %41 = math.exp %40 : vector<8x32xf32>
      %cst_32 = arith.constant 1.000000e+00 : f32
      %42 = vector.broadcast %cst_32 : f32 to vector<8x32xf32>
      %43 = arith.addf %42, %41 : vector<8x32xf32>
      %44 = arith.divf %42, %43 : vector<8x32xf32>
      %c0_33 = arith.constant 0 : index
      %c0_34 = arith.constant 0 : index
      %45 = vector.load %arg4[%c0_33, %c0_34] : memref<32x32xbf16, #tpu.memory_space<vmem>>, vector<32x32xbf16>
      %cst_35 = arith.constant dense<0.000000e+00> : vector<8x32xf32>
      %46 = tpu.matmul %29, %45, %cst_35 {dimension_numbers = #tpu.dot_dimension_numbers<[1], [0], [0], [1], [0, 0, 1, 1], [], []>} : vector<8x32xbf16>, vector<32x32xbf16>, vector<8x32xf32> -> vector<8x32xf32>
      %c0_36 = arith.constant 0 : index
      %c0_37 = arith.constant 0 : index
      %47 = vector.load %arg7[%c0_36, %c0_37] : memref<32x32xbf16, #tpu.memory_space<vmem>>, vector<32x32xbf16>
      %cst_38 = arith.constant dense<0.000000e+00> : vector<8x32xf32>
      %48 = tpu.matmul %31, %47, %cst_38 {dimension_numbers = #tpu.dot_dimension_numbers<[1], [0], [0], [1], [0, 0, 1, 1], [], []>} : vector<8x32xbf16>, vector<32x32xbf16>, vector<8x32xf32> -> vector<8x32xf32>
      %49 = arith.addf %46, %48 : vector<8x32xf32>
      %c0_39 = arith.constant 0 : index
      %c0_40 = arith.constant 0 : index
      %50 = vector.load %arg10[%c0_39, %c0_40] : memref<1x32xf32, #tpu.memory_space<vmem>>, vector<1x32xf32>
      %51 = vector.broadcast %50 : vector<1x32xf32> to vector<8x32xf32>
      %52 = arith.addf %49, %51 : vector<8x32xf32>
      %53 = arith.negf %52 : vector<8x32xf32>
      %54 = math.exp %53 : vector<8x32xf32>
      %cst_41 = arith.constant 1.000000e+00 : f32
      %55 = vector.broadcast %cst_41 : f32 to vector<8x32xf32>
      %56 = arith.addf %55, %54 : vector<8x32xf32>
      %57 = arith.divf %55, %56 : vector<8x32xf32>
      %c0_42 = arith.constant 0 : index
      %c0_43 = arith.constant 0 : index
      %58 = vector.load %arg5[%c0_42, %c0_43] : memref<32x32xbf16, #tpu.memory_space<vmem>>, vector<32x32xbf16>
      %cst_44 = arith.constant dense<0.000000e+00> : vector<8x32xf32>
      %59 = tpu.matmul %29, %58, %cst_44 {dimension_numbers = #tpu.dot_dimension_numbers<[1], [0], [0], [1], [0, 0, 1, 1], [], []>} : vector<8x32xbf16>, vector<32x32xbf16>, vector<8x32xf32> -> vector<8x32xf32>
      %c0_45 = arith.constant 0 : index
      %c0_46 = arith.constant 0 : index
      %60 = vector.load %arg11[%c0_45, %c0_46] : memref<1x32xf32, #tpu.memory_space<vmem>>, vector<1x32xf32>
      %61 = vector.broadcast %60 : vector<1x32xf32> to vector<8x32xf32>
      %62 = arith.addf %59, %61 : vector<8x32xf32>
      %c0_47 = arith.constant 0 : index
      %c0_48 = arith.constant 0 : index
      %63 = vector.load %arg8[%c0_47, %c0_48] : memref<32x32xbf16, #tpu.memory_space<vmem>>, vector<32x32xbf16>
      %cst_49 = arith.constant dense<0.000000e+00> : vector<8x32xf32>
      %64 = tpu.matmul %31, %63, %cst_49 {dimension_numbers = #tpu.dot_dimension_numbers<[1], [0], [0], [1], [0, 0, 1, 1], [], []>} : vector<8x32xbf16>, vector<32x32xbf16>, vector<8x32xf32> -> vector<8x32xf32>
      %c0_50 = arith.constant 0 : index
      %c0_51 = arith.constant 0 : index
      %65 = vector.load %arg12[%c0_50, %c0_51] : memref<1x32xf32, #tpu.memory_space<vmem>>, vector<1x32xf32>
      %66 = vector.broadcast %65 : vector<1x32xf32> to vector<8x32xf32>
      %67 = arith.addf %64, %66 : vector<8x32xf32>
      %68 = arith.mulf %44, %67 : vector<8x32xf32>
      %69 = arith.addf %62, %68 : vector<8x32xf32>
      %70 = math.tanh %69 : vector<8x32xf32>
      %cst_52 = arith.constant 1.000000e+00 : f32
      %71 = vector.broadcast %cst_52 : f32 to vector<8x32xf32>
      %72 = arith.subf %71, %57 : vector<8x32xf32>
      %73 = arith.mulf %72, %70 : vector<8x32xf32>
      %74 = arith.mulf %57, %30 : vector<8x32xf32>
      %75 = arith.addf %73, %74 : vector<8x32xf32>
      %c0_53 = arith.constant 0 : index
      %c0_54 = arith.constant 0 : index
      %76 = vector.load %arg17[%c0_53, %c0_54] : memref<8x32xf32, #tpu.memory_space<vmem>>, vector<8x32xf32>
      tpu.vector_store %arg17[%c0_53, %c0_54], %75 {strides = array<i32>} : memref<8x32xf32, #tpu.memory_space<vmem>>, vector<8x32xf32>,
      %77 = arith.truncf %75 : vector<8x32xf32> to vector<8x32xbf16>
      %c0_55 = arith.constant 0 : index
      %c0_56 = arith.constant 0 : index
      %78 = vector.load %arg18[%c0_55, %c0_56] : memref<8x32xbf16, #tpu.memory_space<vmem>>, vector<8x32xbf16>
      tpu.vector_store %arg18[%c0_55, %c0_56], %77 {strides = array<i32>} : memref<8x32xbf16, #tpu.memory_space<vmem>>, vector<8x32xbf16>,
      %cst_57 = arith.constant 0xFF800000 : f32
      %79 = vector.broadcast %cst_57 : f32 to vector<8x1xf32>
      %c0_58 = arith.constant 0 : index
      %c0_59 = arith.constant 0 : index
      %80 = vector.load %arg19[%c0_58, %c0_59] : memref<8x1xf32, #tpu.memory_space<vmem>>, vector<8x1xf32>
      tpu.vector_store %arg19[%c0_58, %c0_59], %79 {strides = array<i32>} : memref<8x1xf32, #tpu.memory_space<vmem>>, vector<8x1xf32>,
      %cst_60 = arith.constant 0.000000e+00 : f32
      %81 = vector.broadcast %cst_60 : f32 to vector<8x1xf32>
      %c0_61 = arith.constant 0 : index
      %c0_62 = arith.constant 0 : index
      %82 = vector.load %arg20[%c0_61, %c0_62] : memref<8x1xf32, #tpu.memory_space<vmem>>, vector<8x1xf32>
      tpu.vector_store %arg20[%c0_61, %c0_62], %81 {strides = array<i32>} : memref<8x1xf32, #tpu.memory_space<vmem>>, vector<8x1xf32>,
    } else {
    }
    %c0 = arith.constant 0 : index
    %c0_1 = arith.constant 0 : index
    %3 = vector.load %arg18[%c0, %c0_1] : memref<8x32xbf16, #tpu.memory_space<vmem>>, vector<8x32xbf16>
    %c0_2 = arith.constant 0 : index
    %c0_3 = arith.constant 0 : index
    %4 = vector.load %arg13[%c0_2, %c0_3] : memref<32x512xbf16, #tpu.memory_space<vmem>>, vector<32x512xbf16>
    %cst = arith.constant dense<0.000000e+00> : vector<8x512xf32>
    %5 = tpu.matmul %3, %4, %cst {dimension_numbers = #tpu.dot_dimension_numbers<[1], [0], [0], [1], [0, 0, 1, 1], [], []>} : vector<8x32xbf16>, vector<32x512xbf16>, vector<8x512xf32> -> vector<8x512xf32>
    %c0_4 = arith.constant 0 : index
    %c0_5 = arith.constant 0 : index
    %6 = vector.load %arg14[%c0_4, %c0_5] : memref<1x512xf32, #tpu.memory_space<vmem>>, vector<1x512xf32>
    %7 = vector.broadcast %6 : vector<1x512xf32> to vector<8x512xf32>
    %8 = arith.addf %5, %7 : vector<8x512xf32>
    %c0_6 = arith.constant 0 : index
    %c0_7 = arith.constant 0 : index
    %9 = vector.load %arg15[%c0_6, %c0_7] : memref<8x512xf32, #tpu.memory_space<vmem>>, vector<8x512xf32>
    tpu.vector_store %arg15[%c0_6, %c0_7], %8 {strides = array<i32>} : memref<8x512xf32, #tpu.memory_space<vmem>>, vector<8x512xf32>,
    %c0_8 = arith.constant 0 : index
    %c0_9 = arith.constant 0 : index
    %10 = vector.load %arg19[%c0_8, %c0_9] : memref<8x1xf32, #tpu.memory_space<vmem>>, vector<8x1xf32>
    %cst_10 = arith.constant dense<0xFF800000> : vector<8xf32>
    %11 = vector.multi_reduction <maximumf>, %8, %cst_10 [1] : vector<8x512xf32> to vector<8xf32>
    %12 = vector.shape_cast %11 : vector<8xf32> to vector<8x1xf32>
    %13 = arith.maximumf %10, %12 : vector<8x1xf32>
    %c0_11 = arith.constant 0 : index
    %c0_12 = arith.constant 0 : index
    %14 = vector.load %arg20[%c0_11, %c0_12] : memref<8x1xf32, #tpu.memory_space<vmem>>, vector<8x1xf32>
    %15 = arith.subf %10, %13 : vector<8x1xf32>
    %16 = math.exp %15 : vector<8x1xf32>
    %17 = arith.mulf %14, %16 : vector<8x1xf32>
    %18 = vector.broadcast %13 : vector<8x1xf32> to vector<8x512xf32>
    %19 = arith.subf %8, %18 : vector<8x512xf32>
    %20 = math.exp %19 : vector<8x512xf32>
    %cst_13 = arith.constant dense<0.000000e+00> : vector<8xf32>
    %21 = vector.multi_reduction <add>, %20, %cst_13 [1] : vector<8x512xf32> to vector<8xf32>
    %22 = vector.shape_cast %21 : vector<8xf32> to vector<8x1xf32>
    %23 = arith.addf %17, %22 : vector<8x1xf32>
    %c0_14 = arith.constant 0 : index
    %c0_15 = arith.constant 0 : index
    %24 = vector.load %arg20[%c0_14, %c0_15] : memref<8x1xf32, #tpu.memory_space<vmem>>, vector<8x1xf32>
    tpu.vector_store %arg20[%c0_14, %c0_15], %23 {strides = array<i32>} : memref<8x1xf32, #tpu.memory_space<vmem>>, vector<8x1xf32>,
    %c0_16 = arith.constant 0 : index
    %c0_17 = arith.constant 0 : index
    %25 = vector.load %arg19[%c0_16, %c0_17] : memref<8x1xf32, #tpu.memory_space<vmem>>, vector<8x1xf32>
    tpu.vector_store %arg19[%c0_16, %c0_17], %13 {strides = array<i32>} : memref<8x1xf32, #tpu.memory_space<vmem>>, vector<8x1xf32>,
    %c0_i32_18 = arith.constant 0 : i32
    %26 = arith.cmpi eq, %arg0, %c0_i32_18 : i32
    %27 = arith.extui %26 : i1 to i32
    %c0_i32_19 = arith.constant 0 : i32
    %28 = arith.cmpi ne, %27, %c0_i32_19 : i32
    scf.if %28 {
      %c0_20 = arith.constant 0 : index
      %c0_21 = arith.constant 0 : index
      %29 = vector.load %arg19[%c0_20, %c0_21] : memref<8x1xf32, #tpu.memory_space<vmem>>, vector<8x1xf32>
      %c0_22 = arith.constant 0 : index
      %c0_23 = arith.constant 0 : index
      %30 = vector.load %arg20[%c0_22, %c0_23] : memref<8x1xf32, #tpu.memory_space<vmem>>, vector<8x1xf32>
      %31 = math.log %30 : vector<8x1xf32>
      %32 = arith.addf %29, %31 : vector<8x1xf32>
      %c0_24 = arith.constant 0 : index
      %c0_25 = arith.constant 0 : index
      %33 = vector.load %arg16[%c0_24, %c0_25] : memref<8x1xf32, #tpu.memory_space<vmem>>, vector<8x1xf32>
      tpu.vector_store %arg16[%c0_24, %c0_25], %32 {strides = array<i32>} : memref<8x1xf32, #tpu.memory_space<vmem>>, vector<8x1xf32>,
    } else {
    }
    return
  }
  func.func @transform_0(%arg0: i32) -> (i32, i32) {
    %c0_i32 = arith.constant 0 : i32
    %c0_i32_0 = arith.constant 0 : i32
    %c0_i32_1 = arith.constant 0 : i32
    return %c0_i32, %c0_i32_0 : i32, i32
  }
  func.func @transform_1(%arg0: i32) -> (i32, i32) {
    %c0_i32 = arith.constant 0 : i32
    %c0_i32_0 = arith.constant 0 : i32
    %c0_i32_1 = arith.constant 0 : i32
    return %c0_i32, %c0_i32_0 : i32, i32
  }
  func.func @transform_2(%arg0: i32) -> (i32, i32) {
    %c0_i32 = arith.constant 0 : i32
    %c0_i32_0 = arith.constant 0 : i32
    %c0_i32_1 = arith.constant 0 : i32
    return %c0_i32, %c0_i32_0 : i32, i32
  }
  func.func @transform_3(%arg0: i32) -> (i32, i32) {
    %c0_i32 = arith.constant 0 : i32
    %c0_i32_0 = arith.constant 0 : i32
    %c0_i32_1 = arith.constant 0 : i32
    return %c0_i32, %c0_i32_0 : i32, i32
  }
  func.func @transform_4(%arg0: i32) -> (i32, i32) {
    %c0_i32 = arith.constant 0 : i32
    %c0_i32_0 = arith.constant 0 : i32
    %c0_i32_1 = arith.constant 0 : i32
    return %c0_i32, %c0_i32_0 : i32, i32
  }
  func.func @transform_5(%arg0: i32) -> (i32, i32) {
    %c0_i32 = arith.constant 0 : i32
    %c0_i32_0 = arith.constant 0 : i32
    %c0_i32_1 = arith.constant 0 : i32
    return %c0_i32, %c0_i32_0 : i32, i32
  }
  func.func @transform_6(%arg0: i32) -> (i32, i32) {
    %c0_i32 = arith.constant 0 : i32
    %c0_i32_0 = arith.constant 0 : i32
    %c0_i32_1 = arith.constant 0 : i32
    return %c0_i32, %c0_i32_0 : i32, i32
  }
  func.func @transform_7(%arg0: i32) -> (i32, i32) {
    %c0_i32 = arith.constant 0 : i32
    %c0_i32_0 = arith.constant 0 : i32
    %c0_i32_1 = arith.constant 0 : i32
    return %c0_i32, %c0_i32_0 : i32, i32
  }
  func.func @transform_8(%arg0: i32) -> (i32, i32) {
    %c0_i32 = arith.constant 0 : i32
    %c0_i32_0 = arith.constant 0 : i32
    %c0_i32_1 = arith.constant 0 : i32
    return %c0_i32, %c0_i32_0 : i32, i32
  }
  func.func @transform_9(%arg0: i32) -> (i32, i32) {
    %c0_i32 = arith.constant 0 : i32
    %c0_i32_0 = arith.constant 0 : i32
    %c0_i32_1 = arith.constant 0 : i32
    return %c0_i32, %c0_i32_0 : i32, i32
  }
  func.func @transform_10(%arg0: i32) -> (i32, i32) {
    %c0_i32 = arith.constant 0 : i32
    %c0_i32_0 = arith.constant 0 : i32
    %c0_i32_1 = arith.constant 0 : i32
    return %c0_i32, %c0_i32_0 : i32, i32
  }
  func.func @transform_11(%arg0: i32) -> (i32, i32) {
    %c0_i32 = arith.constant 0 : i32
    %c0_i32_0 = arith.constant 0 : i32
    %c0_i32_1 = arith.constant 0 : i32
    return %c0_i32, %c0_i32_0 : i32, i32
  }
  func.func @transform_12(%arg0: i32) -> (i32, i32) {
    %c0_i32 = arith.constant 0 : i32
    %c0_i32_0 = arith.constant 0 : i32
    return %c0_i32, %arg0 : i32, i32
  }
  func.func @transform_13(%arg0: i32) -> (i32, i32) {
    %c0_i32 = arith.constant 0 : i32
    %c0_i32_0 = arith.constant 0 : i32
    return %c0_i32, %arg0 : i32, i32
  }
  func.func @transform_14(%arg0: i32) -> (i32, i32) {
    %c0_i32 = arith.constant 0 : i32
    %c0_i32_0 = arith.constant 0 : i32
    return %c0_i32, %arg0 : i32, i32
  }
  func.func @transform_15(%arg0: i32) -> (i32, i32) {
    %c0_i32 = arith.constant 0 : i32
    %c0_i32_0 = arith.constant 0 : i32
    %c0_i32_1 = arith.constant 0 : i32
    return %c0_i32, %c0_i32_0 : i32, i32
  }
  func.func @transform_16(%arg0: i32) -> (i32, i32) {
    %c0_i32 = arith.constant 0 : i32
    %c0_i32_0 = arith.constant 0 : i32
    %c0_i32_1 = arith.constant 0 : i32
    return %c0_i32, %c0_i32_0 : i32, i32
  }
}

</mosaic_0001>

<bundles_post_ra>
// kernel: attn_decoder_forward.1
= control target key start
LH: loop header
LB: loop body
LE: loop exit
PB: predicated region body
PF: predicated region fallthrough
CT: control target
= control target key end

     0   :  { %vm78_vm0 = vcmask 261120   ;;  %vm304_vm9 = vcmask 257024   ;;  %vm306_vm10 = vcmask 7168   ;;  %s868_s5 = inlined_call_operand.vmem [shape: bf16[32,32], index: 5, kind: input, shape index: {}]   ;;  %s869_s2 = inlined_call_operand.vmem [shape: bf16[32,32], index: 2, kind: input, shape index: {}]   ;;  %s870_s6 = inlined_call_operand.vmem [shape: bf16[32,32], index: 6, kind: input, shape index: {}]   ;;  %s871_s3 = inlined_call_operand.vmem [shape: bf16[32,32], index: 3, kind: input, shape index: {}]   ;;  %s872_s1 = inlined_call_operand.vmem [shape: f32[8,32], index: 1, kind: input, shape index: {}]   ;;  %s873_s7 = inlined_call_operand.vmem [shape: bf16[32,32], index: 7, kind: input, shape index: {}]   ;;  %s874_s4 = inlined_call_operand.vmem [shape: bf16[32,32], index: 4, kind: input, shape index: {}]   ;;  %s875_s0 = inlined_call_operand.vmem [shape: bf16[8,32], index: 0, kind: input, shape index: {}]   ;;  %s876_s8 = inlined_call_operand.vmem [shape: f32[1,32], index: 8, kind: input, shape index: {}]   ;;  %s877_s9 = inlined_call_operand.vmem [shape: f32[1,32], index: 9, kind: input, shape index: {}]   ;;  %s878_s11 = inlined_call_operand.vmem [shape: f32[1,32], index: 11, kind: input, shape index: {}]   ;;  %s879_s10 = inlined_call_operand.vmem [shape: f32[1,32], index: 10, kind: input, shape index: {}]   ;;  %s880_s12 = inlined_call_operand.vmem [shape: bf16[32,512], index: 12, kind: input, shape index: {}]   ;;  %s881_s16 = inlined_call_operand.vmem [shape: f32[8,32], index: 16, kind: output, shape index: {2}]   ;;  %s882_s13 = inlined_call_operand.vmem [shape: f32[1,512], index: 13, kind: input, shape index: {}]   ;;  %s883_s14 = inlined_call_operand.vmem [shape: f32[8,512], index: 14, kind: output, shape index: {0}]   ;;  %s884_s15 = inlined_call_operand.vmem [shape: f32[8,1], index: 15, kind: output, shape index: {1}]  }
   0x1   :  { %886 = sst [smem:[#allocation5_spill]] %s868_s5  ;;  %v580_v1 = vld [vmem:[%s869_s2 + $0x8] sm:$0xff]  ;;  %v579_v5 = vld [vmem:[%s869_s2] sm:$0xff]  ;;  %v597_v36 = vld [vmem:[%s880_s12 + $0x2c] sm:$0xf0] }
   0x2   :  { %s887_s23 = sld [smem:[#allocation5_spill]]  ;;  %v586_v2 = vld [vmem:[%s870_s6 + $0x8] sm:$0xff]  ;;  %116 = vmatpush.bf16.msra.mxu1 %v580_v1  ;;  %v738_v6 = vld [vmem:[%s872_s1] sm:$0xff]  ;;  %v563_v39 = vld [vmem:[%s880_s12 + $0x30] sm:$0xf0] }
   0x3   :  { %v584_v3 = vld [vmem:[%s871_s3 + $0x8] sm:$0xff]  ;;  %173 = vmatpush.bf16.msra.mxu2 %v586_v2  ;;  %v585_v7 = vld [vmem:[%s870_s6] sm:$0xff]  ;;  %v57_v11 = vpack.c.bf16 %v738_v6, %v738_v6  ;;  %v598_v42 = vld [vmem:[%s880_s12 + $0x34] sm:$0xf0] }
   0x4   :  { %198 = vmatpush.bf16.msra.mxu3 %v584_v3  ;;  %v583_v8 = vld [vmem:[%s871_s3] sm:$0xff]  ;;  %v590_v9 = vld [vmem:[%s873_s7 + $0x8] sm:$0xff]  ;;  %v571_v46 = vld [vmem:[%s880_s12 + $0x38] sm:$0xf0] }
   0x5   :  { %v588_v10 = vld [vmem:[%s874_s4 + $0x8] sm:$0xff]  ;;  %v55_v12 = vld [vmem:[%s875_s0] sm:$0xf]  ;;  %v595_v38 = vld [vmem:[%s880_s12 + $0x24] sm:$0xf] }
   0x6   :  { %117 = vmatpush.bf16.msra.mxu1 %v579_v5  ;;  %v589_v13 = vld [vmem:[%s873_s7] sm:$0xff]  ;;  %v566_v40 = vor.u32 %v595_v38, %v563_v39  ;;  %v569_v41 = vld [vmem:[%s880_s12 + $0x28] sm:$0xf]  ;;  %v596_v43 = vld [vmem:[%s880_s12 + $0x2c] sm:$0xf] }
   0x7   :  { %174 = vmatpush.bf16.msra.mxu2 %v585_v7  ;;  %v587_v14 = vld [vmem:[%s874_s4] sm:$0xff]  ;;  %v570_v45 = vor.u32 %v598_v42, %v569_v41  ;;  %v593_v48 = vld [vmem:[%s880_s12 + $0xc] sm:$0xf0]  ;;  %v574_v50 = vor.u32 %v596_v43, %v571_v46  ;;  %v547_v53 = vld [vmem:[%s880_s12 + $0x10] sm:$0xf0] }
   0x8   :  { %v582_v0 = vld [vmem:[%s887_s23 + $0x8] sm:$0xff]  ;;  %v581_v4 = vld [vmem:[%s887_s23] sm:$0xff]  ;;  %199 = vmatpush.bf16.msra.mxu3 %v583_v8  ;;  %v594_v57 = vld [vmem:[%s880_s12 + $0x14] sm:$0xf0] }
   0x9   :  { %88 = vmatpush.bf16.msra.mxu0 %v582_v0  ;;  %504 = vmatmul.msk.bf16.vlgmr.msra.gmra.mxu1 %vm78_vm0, %v55_v12  ;;  %v603_v15 = vld [vmem:[%s876_s8] ss:$0 sm:$0xff]  ;;  %v591_v52 = vld [vmem:[%s880_s12 + $0x4] sm:$0xf]  ;;  %v553_v56 = vld [vmem:[%s880_s12 + $0x8] sm:$0xf] }
   0xa   :  { %288 = vmatpush.bf16.msrb.mxu1 %v590_v9  ;;  %514 = vmatmul.msk.bf16.vlgmr.msra.gmra.mxu2 %vm78_vm0, %v57_v11  ;;  %v604_v21 = vld [vmem:[%s877_s9] ss:$0 sm:$0xff]  ;;  %v550_v55 = vor.u32 %v591_v52, %v547_v53  ;;  %v592_v58 = vld [vmem:[%s880_s12 + $0xc] sm:$0xf]  ;;  %v555_v60 = vld [vmem:[%s880_s12 + $0x18] sm:$0xf0]  ;;  %v554_v63 = vor.u32 %v594_v57, %v553_v56 }
   0xb   :  { %523 = vmatmul.msk.bf16.vlgmr.msra.gmra.mxu3 %vm78_vm0, %v55_v12  ;;  %v561_v35 = vld [vmem:[%s880_s12 + $0x20] sm:$0xf]  ;;  %v558_v0 = vor.u32 %v592_v58, %v555_v60  ;;  %v630_v53 = vmov 0  }
   0xc   :  { %v562_v37 = vor.u32 %v597_v36, %v561_v35  ;;  %v545_v47 = vld [vmem:[%s880_s12] sm:$0xf]  ;;  %391 = vmatpush.bf16.msrb.mxu3 %v566_v40  ;;  %602 = vset.pattern.permute.xlu0 %v630_v53 }
   0xd   :  { %89 = vmatpush.bf16.msra.mxu0 %v581_v4  ;;  %v546_v51 = vor.u32 %v593_v48, %v545_v47  ;;  %v605_v2 = vld [vmem:[%s878_s11] ss:$0 sm:$0xff] }
   0xe   :  { %289 = vmatpush.bf16.msrb.mxu1 %v589_v13  ;;  %378 = vmatpush.bf16.msrb.mxu2 %v562_v37  ;;  %v606_v7 = vld [vmem:[%s879_s10] ss:$0 sm:$0xff] }
  0x10   :  { %495 = vmatmul.msk.bf16.vlgmr.msra.gmra.mxu0 %vm78_vm0, %v57_v11  ;;  %392 = vmatpush.bf16.msrb.mxu3 %v550_v55 }
  0x11   :  { %255 = vmatpush.bf16.msrb.mxu0 %v588_v10 }
  0x12   :  { %417 = vmatpush.bf16.msra.mxu1 %v574_v50  ;;  %379 = vmatpush.bf16.msrb.mxu2 %v546_v51 }
  0x15   :  { %256 = vmatpush.bf16.msrb.mxu0 %v587_v14 }
  0x16   :  { %418 = vmatpush.bf16.msra.mxu1 %v558_v0 }
  0x19   :  { %542 = vmatmul.msk.bf16.vlgmr.msrb.gmra.mxu1 %vm78_vm0, %v57_v11  ;;  %404 = vmatpush.bf16.msra.mxu0 %v570_v45 }
  0x1d   :  { %405 = vmatpush.bf16.msra.mxu0 %v554_v63 }
  0x20   :  { %533 = vmatmul.msk.bf16.vlgmr.msrb.gmra.mxu0 %vm78_vm0, %v55_v12 }
  0x86   :  { %v119_v17 = vpop.f32.mrf.mxu1 }
  0x8d   :  { %v91_v16 = vpop.f32.mrf.mxu0  ;;  %v176_v22 = vpop.f32.mrf.mxu2 }
  0x8e   :  { %v120_v18 = vadd.f32 %v119_v17, %v91_v16  ;;  %v201_v23 = vpop.f32.mrf.mxu3  ;;  %v121_v26 = vpop.f32.mrf.mxu1 }
  0x8f   :  { %v202_v24 = vadd.f32 %v201_v23, %v176_v22 }
  0x90   :  { %v127_v19 = vadd.f32 %v603_v15, %v120_v18 }
  0x91   :  { %v209_v27 = vadd.f32 %v604_v21, %v202_v24 }
  0x92   :  { %v505_v20 = vmul.f32 -1.442695, %v127_v19 }
  0x93   :  { %v524_v28 = vmul.f32 -1.442695, %v209_v27 }
  0x94   :  { %607 = vpow2.f32 %v505_v20 }
  0x95   :  { %v93_v25 = vpop.f32.mrf.mxu0  ;;  %609 = vpow2.f32 %v524_v28  ;;  %v178_v31 = vpop.f32.mrf.mxu2 }
  0x96   :  { %v203_v32 = vpop.f32.mrf.mxu3  ;;  %v291_v33 = vpop.f32.mrf.mxu1 }
  0x97   :  { %v292_v10 = vadd.f32 %v605_v2, %v291_v33  ;;  %v318_v33 = vld [vmem:[%s882_s13] sm:$0xf] }
  0x98   :  { %v323_v35 = vperm.slane %v318_v33, 3  ;;  %v320_v40 = vperm.slane %v318_v33, 0  ;;  %v321_v41 = vperm.slane %v318_v33, 1 }
  0x9a   :  { %v608_v29 = vpop.eup %607 }
  0x9b   :  { %v775_v30 = vadd.f32 1.0, %v608_v29  ;;  %v610_v44 = vpop.eup %609 }
  0x9c   :  { %v213_v49 = vadd.f32 1.0, %v610_v44 }
  0x9d   :  { %611 = vrcp.f32 %v775_v30  ;;  %v258_v34 = vpop.f32.mrf.mxu0  ;;  %v143_v3 = vand.u32 2147483648, %v775_v30  ;;  %v141_v5 = vand.u32 2147483647, %v775_v30  ;;  %vm137_vm2 = vweird.f32 %v775_v30 }
  0x9e   :  { %613 = vrcp.f32 %v213_v49  ;;  %v293_v61 = vpop.f32.mrf.mxu1  ;;  %v259_v14 = vadd.f32 %v606_v7, %v258_v34  ;;  %v225_v17 = vand.u32 2147483648, %v213_v49  ;;  %v223_v20 = vand.u32 2147483647, %v213_v49 }
  0x9f   :  { %v144_v12 = vor.u32 1.1754944e-38, %v143_v3  ;;  %vm142_vm4 = vcmp.eq.f32.partialorder %v141_v5, 8.507059e+37  ;;  %vm219_vm6 = vweird.f32 %v213_v49  ;;  %v322_v34 = vperm.slane %v318_v33, 2 }
  0xa0   :  { %v226_v23 = vor.u32 1.1754944e-38, %v225_v17  ;;  %vm224_vm8 = vcmp.eq.f32.partialorder %v223_v20, 8.507059e+37 }
  0xa3   :  { %v612_v54 = vpop.eup %611 }
  0xa4   :  { %v133_v59 = vmul.f32 %v612_v54, %v775_v30  ;;  %vm138_vm1 = vweird.f32 %v612_v54  ;;  %v614_v8 = vpop.eup %613 }
  0xa5   :  { %v260_v62 = vpop.f32.mrf.mxu0  ;;  %v215_v11 = vmul.f32 %v614_v8, %v213_v49  ;;  %vm139_vm3 = vmor %vm137_vm2, %vm138_vm1  ;;  %vm220_vm5 = vweird.f32 %v614_v8 }
  0xa6   :  { %v134_v1 = vsub.f32 1.0, %v133_v59  ;;  %vm221_vm7 = vmor %vm219_vm6, %vm220_vm5 }
  0xa7   :  { %v216_v15 = vsub.f32 1.0, %v215_v11 }
  0xa8   :  { %v135_v4 = vmul.f32 %v612_v54, %v134_v1 }
  0xa9   :  { %v217_v19 = vmul.f32 %v614_v8, %v216_v15 }
  0xaa   :  { %v136_v9 = vadd.f32 %v612_v54, %v135_v4 }
  0xab   :  { %v218_v22 = vadd.f32 %v614_v8, %v217_v19 }
  0xac   :  { %v140_v13 = vsel %vm139_vm3, %v612_v54, %v136_v9  ;;  %v631_v54 = vmov 0.0  }
  0xad   :  { %v145_v16 = vsel %vm142_vm4, %v144_v12, %v140_v13  ;;  %v222_v24 = vsel %vm221_vm7, %v614_v8, %v218_v22  ;;  %308 = vst.msk [vmem:[#allocation4] sm:$0xff] %vm306_vm10, %v631_v54 }
  0xae   :  { %v295_v18 = vmul.f32 %v292_v10, %v145_v16  ;;  %v227_v25 = vsel %vm224_vm8, %v226_v23, %v222_v24 }
  0xaf   :  { %v298_v26 = vsub.f32 1.0, %v227_v25  ;;  %v300_v29 = vmul.f32 %v227_v25, %v738_v6  ;;  %v629_v6 = vmov -inf  }
  0xb0   :  { %v296_v21 = vadd.f32 %v295_v18, %v259_v14  ;;  %307 = vst.msk [vmem:[#allocation3] sm:$0xff] %vm306_vm10, %v629_v6 }
  0xb2   :  { %615 = vtanh.f32 %v296_v21 }
  0xb4   :  { %v435_v14 = vld [vmem:[#allocation4] sm:$0xff] }
  0xb7   :  { %v428_v55 = vld [vmem:[#allocation3] sm:$0xff] }
  0xb8   :  { %v616_v27 = vpop.eup %615 }
  0xb9   :  { %v299_v28 = vmul.f32 %v616_v27, %v298_v26 }
  0xbb   :  { %v301_v30 = vadd.f32 %v300_v29, %v299_v28 }
  0xbd   :  { %302 = vst.msk [vmem:[%s881_s16] sm:$0xff] %vm78_vm0, %v301_v30  ;;  %v303_v31 = vpack.c.bf16 %v301_v30, %v301_v30 }
  0xbf   :  { %305 = vst.msk [vmem:[#allocation2] sm:$0xf] %vm304_vm9, %v303_v31 }
  0xc6   :  { %v309_v32 = vld [vmem:[#allocation2] sm:$0xf] }
  0xc7   :  { %575 = vmatmul.msk.bf16.vlgmr.msrb.gmra.mxu2 %vm78_vm0, %v309_v32  ;;  %576 = vmatmul.msk.bf16.vlgmr.msrb.gmra.mxu3 %vm78_vm0, %v309_v32 }
  0xc8   :  { %577 = vmatmul.msk.bf16.vlgmr.msra.gmra.mxu0 %vm78_vm0, %v309_v32  ;;  %578 = vmatmul.msk.bf16.vlgmr.msra.gmra.mxu1 %vm78_vm0, %v309_v32 }
 0x145   :  { %v407_v36 = vpop.f32.mrf.mxu0  ;;  %v420_v37 = vpop.f32.mrf.mxu1 }
 0x146   :  { %v408_v38 = vadd.f32 %v407_v36, %v322_v34  ;;  %v421_v39 = vadd.f32 %v420_v37, %v323_v35 }
 0x148   :  { %426 = vst [vmem:[%s883_s14 + $0x10] sm:$0xff] %v408_v38  ;;  %v430_v49 = vmax.f32 %v408_v38, %v421_v39 }
 0x149   :  { %427 = vst [vmem:[%s883_s14 + $0x18] sm:$0xff] %v421_v39 }
 0x14a   :  { %v381_v42 = vpop.f32.mrf.mxu2  ;;  %v394_v43 = vpop.f32.mrf.mxu3 }
 0x14b   :  { %v382_v44 = vadd.f32 %v381_v42, %v320_v40  ;;  %v395_v45 = vadd.f32 %v394_v43, %v321_v41 }
 0x14d   :  { %424 = vst [vmem:[%s883_s14] sm:$0xff] %v382_v44  ;;  %v409_v46 = vpop.f32.mrf.mxu0  ;;  %v422_v47 = vpop.f32.mrf.mxu1  ;;  %v429_v48 = vmax.f32 %v382_v44, %v395_v45 }
 0x14e   :  { %425 = vst [vmem:[%s883_s14 + $0x8] sm:$0xff] %v395_v45 }
 0x14f   :  { %v431_v50 = vmax.f32 %v429_v48, %v430_v49 }
 0x151   :  { %432 = vmax.xlane.f32.xlu0 %v431_v50 }
 0x152   :  { %v383_v51 = vpop.f32.mrf.mxu2  ;;  %v396_v52 = vpop.f32.mrf.mxu3 }
 0x1c4   :  { %v433_v56 = vpop.xlane.xlu0 %432 }
 0x1c5   :  { %v434_v57 = vmax.f32 %v428_v55, %v433_v56 }
 0x1c7   :  { %v436_v58 = vsub.f32 %v428_v55, %v434_v57  ;;  %465 = vst.msk [vmem:[#allocation3] sm:$0xff] %vm306_vm10, %v434_v57  ;;  %442 = vperm.xlu0 %602, %v434_v57  }
 0x1c9   :  { %v437_v12 = vmul.f32 1.442695, %v436_v58 }
 0x1ce   :  { %v469_v21 = vld [vmem:[#allocation3] sm:$0xff] }
 0x239   :  { %v443_v59 = vpop.permute.xlu0 %442 }
 0x23a   :  { %v445_v60 = vsub.f32 %v382_v44, %v443_v59  ;;  %v446_v61 = vsub.f32 %v395_v45, %v443_v59  ;;  %v447_v62 = vsub.f32 %v408_v38, %v443_v59  ;;  %v448_v63 = vsub.f32 %v421_v39, %v443_v59 }
 0x23c   :  { %v449_v0 = vmul.f32 1.442695, %v445_v60  ;;  %v451_v1 = vmul.f32 1.442695, %v446_v61  ;;  %v453_v2 = vmul.f32 1.442695, %v447_v62 }
 0x23d   :  { %v455_v3 = vmul.f32 1.442695, %v448_v63 }
 0x23e   :  { %617 = vpow2.f32 %v449_v0 }
 0x23f   :  { %619 = vpow2.f32 %v451_v1 }
 0x240   :  { %621 = vpow2.f32 %v453_v2 }
 0x241   :  { %623 = vpow2.f32 %v455_v3 }
 0x242   :  { %625 = vpow2.f32 %v437_v12 }
 0x244   :  { %v618_v4 = vpop.eup %617 }
 0x245   :  { %v620_v5 = vpop.eup %619 }
 0x246   :  { %v457_v7 = vadd.f32 %v620_v5, %v618_v4  ;;  %v622_v8 = vpop.eup %621 }
 0x247   :  { %v624_v10 = vpop.eup %623 }
 0x248   :  { %v458_v9 = vadd.f32 %v622_v8, %v457_v7  ;;  %v626_v13 = vpop.eup %625 }
 0x249   :  { %v439_v15 = vmul.f32 %v626_v13, %v435_v14 }
 0x24a   :  { %v459_v11 = vadd.f32 %v624_v10, %v458_v9 }
 0x24c   :  { %460 = vadd.xlane.f32.xlu1 %v459_v11 }
 0x2bf   :  { %v461_v16 = vpop.xlane.xlu1 %460 }
 0x2c0   :  { %v462_v17 = vadd.f32 %v461_v16, %v439_v15 }
 0x2c2   :  { %464 = vst.msk [vmem:[#allocation4] sm:$0xff] %vm306_vm10, %v462_v17 }
 0x2c9   :  { %v470_v18 = vld [vmem:[#allocation4] sm:$0xff] }
 0x2ca   :  { %627 = vlog2.f32 %v470_v18 }
 0x2d0   :  { %v628_v19 = vpop.eup %627 }
 0x2d1   :  { %v472_v20 = vmul.f32 0.6931472, %v628_v19 }
 0x2d3   :  { %v473_v22 = vadd.f32 %v472_v20, %v469_v21 }
 0x2d5   :  { %474 = vst.msk [vmem:[%s884_s15] sm:$0xff] %vm306_vm10, %v473_v22 }

</bundles_post_ra>
